<compile_context>
chip_gen: v7x
topology: tpu7x:2x2x1
jax: 0.10.0
libtpu: 0.0.40
codegen_flags: <defaults>
</compile_context>

<pallas_src>
import functools

import jax
import jax.numpy as jnp
from jax.experimental import pallas as pl
from jax.experimental.pallas import tpu as pltpu


def layernorm_kernel(x_ref, gamma_ref, beta_ref, o_ref, *, eps: float, d: int):
    # x_ref: (TM, D) tile of rows; gamma/beta: (1, D) broadcast along rows.
    x = x_ref[...].astype(jnp.float32)

    mean = jnp.mean(x, axis=-1, keepdims=True)              # (TM, 1)
    diff = x - mean                                          # (TM, D)

    # torch.Tensor.std defaults to the *unbiased* estimator (divide by D-1).
    var = jnp.sum(diff * diff, axis=-1, keepdims=True) * (1.0 / (d - 1))
    std = jnp.sqrt(var)                                      # (TM, 1)

    # Spec adds eps to std (not to var).  Exact reciprocal keeps us well within
    # the 1e-4 check; switch to approx=True (EUP slot) if tolerance allows.
    inv = pl.reciprocal(std + eps, approx=False)             # (TM, 1)

    out = diff * inv                                         # (TM, D)
    out = out * gamma_ref[...].astype(jnp.float32) + beta_ref[...].astype(jnp.float32)
    o_ref[...] = out.astype(o_ref.dtype)


def layer_norm(x, gamma, beta, *, eps: float = 1e-12, block_rows: int = 256):
    """x: (..., d_model).  gamma, beta: (d_model,)."""
    orig_shape = x.shape
    d = orig_shape[-1]
    n = 1
    for s in orig_shape[:-1]:
        n *= s
    x2 = x.reshape(n, d)

    # Row tile: multiple of 8 (sublane), capped at block_rows, >= n if small.
    def round_up(a, m):
        return ((a + m - 1) // m) * m

    tm = min(block_rows, round_up(n, 8))
    tm = round_up(tm, 8)
    n_pad = round_up(n, tm)
    if n_pad != n:
        x2 = jnp.pad(x2, ((0, n_pad - n), (0, 0)))

    gamma2 = gamma.reshape(1, d)
    beta2 = beta.reshape(1, d)

    grid = (n_pad // tm,)

    kernel = functools.partial(layernorm_kernel, eps=eps, d=d)

    out = pl.pallas_call(
        kernel,
        out_shape=jax.ShapeDtypeStruct((n_pad, d), x.dtype),
        grid_spec=pltpu.PrefetchScalarGridSpec(
            num_scalar_prefetch=0,
            grid=grid,
            in_specs=[
                pl.BlockSpec((tm, d), lambda i: (i, 0)),     # x row tile
                pl.BlockSpec((1, d), lambda i: (0, 0)),      # gamma (broadcast)
                pl.BlockSpec((1, d), lambda i: (0, 0)),      # beta  (broadcast)
            ],
            out_specs=pl.BlockSpec((tm, d), lambda i: (i, 0)),
        ),
        compiler_params=pltpu.CompilerParams(
            dimension_semantics=("parallel",)),
    )(x2, gamma2, beta2)

    if n_pad != n:
        out = out[:n]
    return out.reshape(orig_shape)


def reference_layernorm(x, gamma, beta, eps=1e-12):
    """Pure-JAX replica of the PyTorch forward for verification."""
    x32 = x.astype(jnp.float32)
    mean = x32.mean(-1, keepdims=True)
    var = x32.var(-1, ddof=1, keepdims=True)   # unbiased, like torch.std default
    std = jnp.sqrt(var)
    out = (x32 - mean) / (std + eps)
    out = gamma.astype(jnp.float32) * out + beta.astype(jnp.float32)
    return out.astype(x.dtype)


if __name__ == "__main__":
    B, S, d_model = 2, 8, 32
    eps = 1e-12

    key = jax.random.PRNGKey(0)
    kx, kg, kb = jax.random.split(key, 3)
    x = jax.random.normal(kx, (B, S, d_model), jnp.float32)
    # Module initializes gamma=ones, beta=zeros; use non-trivial values here to
    # exercise the affine path (still deterministic).
    gamma = 1.0 + 0.1 * jax.random.normal(kg, (d_model,), jnp.float32)
    beta = 0.1 * jax.random.normal(kb, (d_model,), jnp.float32)

    out = layer_norm(x, gamma, beta, eps=eps)
    out = jax.block_until_ready(out)

    ref = reference_layernorm(x, gamma, beta, eps=eps)
    assert out.shape == (B, S, d_model)
    assert jnp.allclose(out, ref, atol=1e-4, rtol=1e-4), "mismatch vs reference"

    print("KERNEL_OK")
</pallas_src>

<mosaic_0001>
module attributes {stable_mosaic.version = 11 : i64} {
  func.func @layernorm_kernel(%arg0: i32, %arg1: memref<16x32xf32, #tpu.memory_space<vmem>>, %arg2: memref<1x32xf32, #tpu.memory_space<vmem>>, %arg3: memref<1x32xf32, #tpu.memory_space<vmem>>, %arg4: memref<16x32xf32, #tpu.memory_space<vmem>>) attributes {dimension_semantics = [#tpu.dimension_semantics<parallel>], iteration_bounds = array<i64: 1>, scalar_prefetch = 0 : i64, scratch_operands = 0 : i64, tpu.core_type = #tpu.core_type<tc>, window_params = [{transform_indices = @transform_0, window_bounds = array<i64: 16, 32>}, {pipeline_mode = #tpu.pipeline_mode<synchronous>, transform_indices = @transform_1, window_bounds = array<i64: 1, 32>}, {pipeline_mode = #tpu.pipeline_mode<synchronous>, transform_indices = @transform_2, window_bounds = array<i64: 1, 32>}, {transform_indices = @transform_3, window_bounds = array<i64: 16, 32>}]} {
    %c0 = arith.constant 0 : index
    %c0_0 = arith.constant 0 : index
    %0 = vector.load %arg1[%c0, %c0_0] : memref<16x32xf32, #tpu.memory_space<vmem>>, vector<16x32xf32>
    %cst = arith.constant dense<0.000000e+00> : vector<16xf32>
    %1 = vector.multi_reduction <add>, %0, %cst [1] : vector<16x32xf32> to vector<16xf32>
    %2 = vector.shape_cast %1 : vector<16xf32> to vector<16x1xf32>
    %cst_1 = arith.constant 3.200000e+01 : f32
    %3 = vector.broadcast %cst_1 : f32 to vector<16x1xf32>
    %4 = arith.divf %2, %3 : vector<16x1xf32>
    %5 = vector.broadcast %4 : vector<16x1xf32> to vector<16x32xf32>
    %6 = arith.subf %0, %5 : vector<16x32xf32>
    %7 = arith.mulf %6, %6 : vector<16x32xf32>
    %cst_2 = arith.constant dense<0.000000e+00> : vector<16xf32>
    %8 = vector.multi_reduction <add>, %7, %cst_2 [1] : vector<16x32xf32> to vector<16xf32>
    %9 = vector.shape_cast %8 : vector<16xf32> to vector<16x1xf32>
    %cst_3 = arith.constant 0.0322580636 : f32
    %10 = vector.broadcast %cst_3 : f32 to vector<16x1xf32>
    %11 = arith.mulf %9, %10 : vector<16x1xf32>
    %12 = math.sqrt %11 : vector<16x1xf32>
    %cst_4 = arith.constant 9.99999996E-13 : f32
    %13 = vector.broadcast %cst_4 : f32 to vector<16x1xf32>
    %14 = arith.addf %12, %13 : vector<16x1xf32>
    %15 = tpu.reciprocal %14 : vector<16x1xf32> -> vector<16x1xf32>
    %16 = vector.broadcast %15 : vector<16x1xf32> to vector<16x32xf32>
    %17 = arith.mulf %6, %16 : vector<16x32xf32>
    %c0_5 = arith.constant 0 : index
    %c0_6 = arith.constant 0 : index
    %18 = vector.load %arg2[%c0_5, %c0_6] : memref<1x32xf32, #tpu.memory_space<vmem>>, vector<1x32xf32>
    %19 = vector.broadcast %18 : vector<1x32xf32> to vector<16x32xf32>
    %20 = arith.mulf %17, %19 : vector<16x32xf32>
    %c0_7 = arith.constant 0 : index
    %c0_8 = arith.constant 0 : index
    %21 = vector.load %arg3[%c0_7, %c0_8] : memref<1x32xf32, #tpu.memory_space<vmem>>, vector<1x32xf32>
    %22 = vector.broadcast %21 : vector<1x32xf32> to vector<16x32xf32>
    %23 = arith.addf %20, %22 : vector<16x32xf32>
    %c0_9 = arith.constant 0 : index
    %c0_10 = arith.constant 0 : index
    %24 = vector.load %arg4[%c0_9, %c0_10] : memref<16x32xf32, #tpu.memory_space<vmem>>, vector<16x32xf32>
    tpu.vector_store %arg4[%c0_9, %c0_10], %23 {strides = array<i32>} : memref<16x32xf32, #tpu.memory_space<vmem>>, vector<16x32xf32>,
    return
  }
  func.func @transform_0(%arg0: i32) -> (i32, i32) {
    %c0_i32 = arith.constant 0 : i32
    %c0_i32_0 = arith.constant 0 : i32
    return %arg0, %c0_i32 : i32, i32
  }
  func.func @transform_1(%arg0: i32) -> (i32, i32) {
    %c0_i32 = arith.constant 0 : i32
    %c0_i32_0 = arith.constant 0 : i32
    %c0_i32_1 = arith.constant 0 : i32
    return %c0_i32, %c0_i32_0 : i32, i32
  }
  func.func @transform_2(%arg0: i32) -> (i32, i32) {
    %c0_i32 = arith.constant 0 : i32
    %c0_i32_0 = arith.constant 0 : i32
    %c0_i32_1 = arith.constant 0 : i32
    return %c0_i32, %c0_i32_0 : i32, i32
  }
  func.func @transform_3(%arg0: i32) -> (i32, i32) {
    %c0_i32 = arith.constant 0 : i32
    %c0_i32_0 = arith.constant 0 : i32
    return %arg0, %c0_i32 : i32, i32
  }
}

</mosaic_0001>

<bundles_post_ra>
// kernel: tpu_custom_call.1
= control target key start
LH: loop header
LB: loop body
LE: loop exit
PB: predicated region body
PF: predicated region fallthrough
CT: control target
= control target key end

     0   :  { %8 = vsyncpa [#allocation3], 0  ;;  %s238_s0 = inlined_call_operand.hbm [shape: f32[16,32], index: 0, kind: input, shape index: {}]   ;;  %s239_s1 = inlined_call_operand.vmem [shape: f32[1,32], index: 1, kind: input, shape index: {}]   ;;  %s240_s2 = inlined_call_operand.vmem [shape: f32[1,32], index: 2, kind: input, shape index: {}]   ;;  %s241_s3 = inlined_call_operand.hbm [shape: f32[16,32], index: 3, kind: output, shape index: {}]  }
   0x1   :  { %9 = vsyncpa [#allocation4], 0  ;;  %s172_s12 = smov [#allocation2]   ;;  %s124_s16 = scalar_lea.hbm %s238_s0, 256 }
   0x2   :  { %s15_s13 = sshll.u32 %s172_s12, 4  ;;  %p125_p0 = scmp.ne.s32.totalorder %s238_s0, %s124_s16  ;;  %s16_s13 = int_to_ptr.vmem [resolvable:$true] %s15_s13 }
   0x3   :  { %p128_p1 = scmp.lt.u32.totalorder %s124_s16, %s238_s0 }
   0x5   :  { %p130_p2 = pnand %p128_p1, %p125_p0 }
   0x7   :  { %133 = shalt.err (!%p130_p2)
}
   0x8   :  { %s134_s21 = scalar_lea.vmem %s16_s13, 256  ;;  %p139_p4 = scmp.lt.s32.totalorder %s16_s13, %s16_s13 }
   0x9   :  { %p135_p3 = scmp.ne.s32.totalorder %s16_s13, %s134_s21  ;;  %p140_p5 = scmp.lt.s32.totalorder %s134_s21, %s134_s21 }
   0xb   :  { %p141_p6 = por %p140_p5, %p139_p4 }
   0xd   :  { %p142_p7 = pnand %p141_p6, %p135_p3 }
   0xf   :  { %145 = shalt.err (!%p142_p7)
}
  0x10   :  { %s173_s22 = smov 128   ;;  %s174_s23 = smov 8  }
  0x11   :  { %21 = dma.hbm_to_vmem [thread:$0]  %s238_s0, 256, %s16_s13, [#allocation3], %s173_s22, %s173_s22, %s174_s23  }
  0x12   :  { %168 = dma.done.wait [#allocation3], 256  }
  0x13   :  { %169 = vsyncadd [#allocation3], 4294967040  ;;  %vm31_vm0 = vcmask 261120   ;;  %v29_v0 = vld [vmem:[#allocation2] sm:$0xff]  ;;  %v30_v1 = vld [vmem:[#allocation2 + $0x8] sm:$0xff]  ;;  %s175_s29 = smov [#allocation5]  }
  0x14   :  { %v32_v2 = vsel %vm31_vm0, %v29_v0, 0.0  ;;  %v35_v3 = vsel %vm31_vm0, %v30_v1, 0.0  ;;  %v110_v31 = vld [vmem:[%s239_s1] ss:$0 sm:$0xff]  ;;  %s98_s30 = sshll.u32 %s175_s29, 4  ;;  %s99_s30 = int_to_ptr.vmem [resolvable:$true] %s98_s30 }
  0x15   :  { %33 = vadd.xlane.f32.xlu0 %v32_v2  ;;  %v111_v33 = vld [vmem:[%s240_s2] ss:$0 sm:$0xff]  ;;  %s146_s4 = scalar_lea.vmem %s99_s30, 256  ;;  %p151_p9 = scmp.lt.s32.totalorder %s99_s30, %s99_s30 }
  0x16   :  { %p147_p8 = scmp.ne.s32.totalorder %s99_s30, %s146_s4  ;;  %p152_p10 = scmp.lt.s32.totalorder %s146_s4, %s146_s4 }
  0x18   :  { %p153_p11 = por %p152_p10, %p151_p9 }
  0x19   :  { %36 = vadd.xlane.f32.xlu0 %v35_v3 }
  0x1a   :  { %p154_p12 = pnand %p153_p11, %p147_p8 }
  0xa2   :  { %v34_v4 = vpop.xlane.xlu0 %33 }
  0xa3   :  { %v39_v5 = vmul.f32 0.03125, %v34_v4 }
  0xa5   :  { %v41_v6 = vsub.f32 %v29_v0, %v39_v5 }
  0xa6   :  { %v37_v7 = vpop.xlane.xlu0 %36 }
  0xa7   :  { %v40_v8 = vmul.f32 0.03125, %v37_v7  ;;  %v43_v9 = vmul.f32 %v41_v6, %v41_v6 }
  0xa9   :  { %v42_v10 = vsub.f32 %v30_v1, %v40_v8  ;;  %v45_v11 = vsel %vm31_vm0, %v43_v9, 0.0 }
  0xaa   :  { %46 = vadd.xlane.f32.xlu1 %v45_v11 }
  0xab   :  { %v44_v12 = vmul.f32 %v42_v10, %v42_v10 }
  0xad   :  { %v48_v13 = vsel %vm31_vm0, %v44_v12, 0.0 }
  0xae   :  { %49 = vadd.xlane.f32.xlu1 %v48_v13 }
 0x137   :  { %v47_v14 = vpop.xlane.xlu1 %46 }
 0x138   :  { %v51_v15 = vmul.f32 0.032258064, %v47_v14 }
 0x13a   :  { %116 = vrsqrt.f32 %v51_v15  ;;  %vm55_vm1 = vcmp.eq.f32.partialorder %v51_v15, inf  ;;  %v58_v20 = vand.u32 2147483648, %v51_v15  ;;  %vm57_vm2 = vcmp.eq.f32.partialorder %v51_v15, 0.0 }
 0x13b   :  { %v50_v16 = vpop.xlane.xlu1 %49 }
 0x13c   :  { %v52_v17 = vmul.f32 0.032258064, %v50_v16 }
 0x13e   :  { %118 = vrsqrt.f32 %v52_v17  ;;  %vm62_vm3 = vcmp.eq.f32.partialorder %v52_v17, inf  ;;  %v65_v26 = vand.u32 2147483648, %v52_v17  ;;  %vm64_vm4 = vcmp.eq.f32.partialorder %v52_v17, 0.0 }
 0x144   :  { %v117_v18 = vpop.eup %116 }
 0x145   :  { %v54_v19 = vmul.f32 %v117_v18, %v51_v15 }
 0x147   :  { %v56_v21 = vsel %vm55_vm1, %v51_v15, %v54_v19 }
 0x148   :  { %v119_v22 = vpop.eup %118  ;;  %v59_v23 = vsel %vm57_vm2, %v58_v20, %v56_v21 }
 0x149   :  { %v67_v24 = vadd.f32 1e-12, %v59_v23  ;;  %v61_v25 = vmul.f32 %v119_v22, %v52_v17 }
 0x14b   :  { %120 = vrcp.f32 %v67_v24  ;;  %v63_v27 = vsel %vm62_vm3, %v52_v17, %v61_v25 }
 0x14c   :  { %v66_v28 = vsel %vm64_vm4, %v65_v26, %v63_v27 }
 0x14d   :  { %v68_v29 = vadd.f32 1e-12, %v66_v28 }
 0x14f   :  { %122 = vrcp.f32 %v68_v29 }
 0x155   :  { %v121_v30 = vpop.eup %120 }
 0x156   :  { %v71_v32 = vmul.f32 %v121_v30, %v41_v6 }
 0x158   :  { %v80_v34 = vmul.f32 %v110_v31, %v71_v32 }
 0x159   :  { %v123_v35 = vpop.eup %122 }
 0x15a   :  { %v72_v36 = vmul.f32 %v123_v35, %v42_v10  ;;  %v89_v37 = vadd.f32 %v111_v33, %v80_v34 }
 0x15c   :  { %v81_v38 = vmul.f32 %v110_v31, %v72_v36  ;;  %91 = vst.msk [vmem:[#allocation5] sm:$0xff] %vm31_vm0, %v89_v37 }
 0x15e   :  { %v90_v39 = vadd.f32 %v111_v33, %v81_v38 }
 0x160   :  { %92 = vst.msk [vmem:[#allocation5 + $0x8] sm:$0xff] %vm31_vm0, %v90_v39 }
 0x161   :  { %157 = shalt.err (!%p154_p12)
}
 0x162   :  { %s158_s5 = scalar_lea.hbm %s241_s3, 256 }
 0x163   :  { %p159_p13 = scmp.ne.s32.totalorder %s241_s3, %s158_s5  ;;  %p162_p0 = scmp.lt.u32.totalorder %s158_s5, %s241_s3 }
 0x165   :  { %p164_p1 = pnand %p162_p0, %p159_p13 }
 0x167   :  { %167 = shalt.err (!%p164_p1)
}
 0x168   :  { %104 = dma.vmem_to_hbm [thread:$0]  %s99_s30, 256, %s241_s3, [#allocation4], %s173_s22, %s173_s22, %s174_s23  }
 0x169   :  { %170 = dma.done.wait [#allocation4], 256  }
 0x16a   :  { %171 = vsyncadd [#allocation4], 4294967040 }
 0x16b   :  { %108 = vsyncpa [#allocation3], 1 }
 0x16c   :  { %109 = vsyncpa [#allocation4], 1 }

</bundles_post_ra>
